<compile_context>
chip_gen: v5e
topology: v5e:2x2
jax: 0.10.0
libtpu: 0.0.40
codegen_flags: <defaults>
</compile_context>

<pallas_src>
import jax
import jax.numpy as jnp
import numpy as np
from jax.experimental import pallas as pl
from jax.experimental.pallas import tpu as pltpu


def _pos_add_kernel(pos_ref, x_ref, o_ref):
    # pos_ref: (tile_s, C)    -- precomputed positional-encoding tile
    # x_ref:   (1, C, tile_s) -- input tile in original NCHW(-flattened) layout
    # o_ref:   (1, tile_s, C) -- output tile in (B, H*W, C) layout
    x_t = jnp.transpose(x_ref[0], (1, 0))   # on-chip XLU transpose (C,s)->(s,C)
    o_ref[0] = x_t + pos_ref[...]           # single full-width VPU add


def _vmem_capacity_bytes():
    """Physical VMEM of the current chip; conservative fallback (v7x = 64 MiB)."""
    try:
        return int(pltpu.get_tpu_info().vmem_capacity_bytes)
    except Exception:
        return 64 * 1024 * 1024


def _pick_seq_tile(hw, c, itemsize, budget_bytes):
    """Sequence-tile length: full H*W if a single block fits the budget, else
    the largest multiple of 128 (lane-dim requirement of the (1, C, tile) x
    block) whose block fits. The tile does NOT need to divide H*W: the grid
    uses pl.cdiv and Pallas masks the ragged last block."""
    if hw * c * itemsize <= budget_bytes:
        return hw
    tile = (budget_bytes // (c * itemsize)) // 128 * 128
    tile = max(tile, 128)            # lane-dim minimum; vmem_limit accounts for it
    return min(tile, hw)


def learnable_pos_embeddings_2d(x_nchw, row_embed, col_embed, *,
                                block_budget_bytes=None):
    """x_nchw: (B, C, H, W) with C == hidden_dim, H == row_embed.shape[0],
    W == col_embed.shape[0]. Returns (B, H*W, C) == x_seq + pos (module fwd)."""
    b, c, h, w = x_nchw.shape
    hd2 = row_embed.shape[1]
    assert row_embed.shape == (h, hd2)
    assert col_embed.shape == (w, hd2)
    assert c == 2 * hd2
    hw = h * w

    # Build the (H*W, C) positional encoding once, outside the kernel (tiny).
    # NOTE: pos is cast to x.dtype before the add (if x is bf16 the embeddings
    # are rounded pre-add); the tested f32 path matches the reference exactly.
    pos = jnp.concatenate(
        [
            jnp.broadcast_to(row_embed[:, None, :], (h, w, hd2)),
            jnp.broadcast_to(col_embed[None, :, :], (h, w, hd2)),
        ],
        axis=-1,
    ).reshape(hw, c).astype(x_nchw.dtype)

    # Contiguous reshape only (free); the layout transpose happens in-kernel.
    x_flat = x_nchw.reshape(b, c, hw)

    itemsize = jnp.dtype(x_nchw.dtype).itemsize
    vmem_cap = _vmem_capacity_bytes()
    if block_budget_bytes is None:
        # ~VMEM/16 per block: 8 MiB on 128 MiB chips (v5e/v6e), 4 MiB on v7x.
        block_budget_bytes = max(1 << 20, min(8 << 20, vmem_cap // 16))

    tile_s = _pick_seq_tile(hw, c, itemsize, block_budget_bytes)
    n_s = pl.cdiv(hw, tile_s)

    # Real VMEM footprint: double-buffered {x, pos, out} blocks (6x) plus the
    # transposed intermediate (~1x) -> budget ~8x block + slack, clamped to
    # leave headroom below the chip's physical VMEM.
    block_bytes = tile_s * c * itemsize
    vmem_limit = min(max(8 * block_bytes + (4 << 20), 32 << 20),
                     vmem_cap - (8 << 20))

    return pl.pallas_call(
        _pos_add_kernel,
        out_shape=jax.ShapeDtypeStruct((b, hw, c), x_nchw.dtype),
        grid_spec=pltpu.PrefetchScalarGridSpec(
            num_scalar_prefetch=0,
            # Batch innermost: the pos block index is constant across it, so
            # its refetch is skipped -> pos read from HBM once per seq tile.
            grid=(n_s, b),
            in_specs=[
                pl.BlockSpec((tile_s, c), lambda s, i: (s, 0)),      # pos
                pl.BlockSpec((1, c, tile_s), lambda s, i: (i, 0, s)),  # x (B,C,HW)
            ],
            out_specs=pl.BlockSpec((1, tile_s, c), lambda s, i: (i, s, 0)),
        ),
        compiler_params=pltpu.CompilerParams(
            dimension_semantics=("parallel", "arbitrary"),
            vmem_limit_bytes=vmem_limit,
        ),
    )(pos, x_flat)


def _ref_fwd(x, row_embed, col_embed):
    b, c, h, w = x.shape
    x_seq = jnp.transpose(x.reshape(b, c, h * w), (0, 2, 1))
    pos = jnp.concatenate(
        [
            jnp.broadcast_to(row_embed[:, None, :], (h, w, c // 2)),
            jnp.broadcast_to(col_embed[None, :, :], (h, w, c // 2)),
        ],
        axis=-1,
    ).reshape(1, h * w, c)
    return x_seq + pos


if __name__ == "__main__":
    # Small, tile-friendly shapes consistent with the module (C == hidden_dim).
    B, HIDDEN, H, W = 2, 128, 16, 16

    key = jax.random.PRNGKey(0)
    k_x, k_row, k_col = jax.random.split(key, 3)

    x = jax.random.normal(k_x, (B, HIDDEN, H, W), dtype=jnp.float32)
    row_embed = jax.random.uniform(k_row, (H, HIDDEN // 2), dtype=jnp.float32)  # torch.rand
    col_embed = jax.random.uniform(k_col, (W, HIDDEN // 2), dtype=jnp.float32)

    out = jax.block_until_ready(learnable_pos_embeddings_2d(x, row_embed, col_embed))
    assert out.shape == (B, H * W, HIDDEN)
    np.testing.assert_allclose(np.asarray(out),
                               np.asarray(_ref_fwd(x, row_embed, col_embed)),
                               rtol=1e-6, atol=1e-6)

    # Also exercise the tiled + ragged path (H*W = 300, not a multiple of 128)
    # by forcing a tiny per-block budget.
    H2, W2 = 12, 25
    x2 = jax.random.normal(k_x, (B, HIDDEN, H2, W2), dtype=jnp.float32)
    row2 = jax.random.uniform(k_row, (H2, HIDDEN // 2), dtype=jnp.float32)
    col2 = jax.random.uniform(k_col, (W2, HIDDEN // 2), dtype=jnp.float32)
    out2 = jax.block_until_ready(
        learnable_pos_embeddings_2d(x2, row2, col2,
                                    block_budget_bytes=128 * HIDDEN * 4))
    np.testing.assert_allclose(np.asarray(out2),
                               np.asarray(_ref_fwd(x2, row2, col2)),
                               rtol=1e-6, atol=1e-6)

    print("KERNEL_OK")
</pallas_src>

<mosaic_0001>
module attributes {stable_mosaic.version = 11 : i64} {
  func.func @_pos_add_kernel(%arg0: i32, %arg1: i32, %arg2: memref<256x128xf32, #tpu.memory_space<vmem>>, %arg3: memref<1x128x256xf32, #tpu.memory_space<vmem>>, %arg4: memref<1x256x128xf32, #tpu.memory_space<vmem>>) attributes {dimension_semantics = [#tpu.dimension_semantics<parallel>, #tpu.dimension_semantics<arbitrary>], iteration_bounds = array<i64: 1, 2>, scalar_prefetch = 0 : i64, scratch_operands = 0 : i64, tpu.core_type = #tpu.core_type<tc>, window_params = [{transform_indices = @transform_0, window_bounds = array<i64: 256, 128>}, {transform_indices = @transform_1, window_bounds = array<i64: 1, 128, 256>}, {transform_indices = @transform_2, window_bounds = array<i64: 1, 256, 128>}]} {
    %c0 = arith.constant 0 : index
    %c0_0 = arith.constant 0 : index
    %c0_1 = arith.constant 0 : index
    %0 = vector.load %arg3[%c0, %c0_0, %c0_1] : memref<1x128x256xf32, #tpu.memory_space<vmem>>, vector<1x128x256xf32>
    %1 = vector.shape_cast %0 : vector<1x128x256xf32> to vector<128x256xf32>
    %2 = tpu.transpose %1, [1, 0] : vector<128x256xf32> -> vector<256x128xf32>
    %c0_2 = arith.constant 0 : index
    %c0_3 = arith.constant 0 : index
    %3 = vector.load %arg2[%c0_2, %c0_3] : memref<256x128xf32, #tpu.memory_space<vmem>>, vector<256x128xf32>
    %4 = arith.addf %2, %3 : vector<256x128xf32>
    %c0_4 = arith.constant 0 : index
    %c0_5 = arith.constant 0 : index
    %c0_6 = arith.constant 0 : index
    %5 = vector.load %arg4[%c0_4, %c0_5, %c0_6] : memref<1x256x128xf32, #tpu.memory_space<vmem>>, vector<1x256x128xf32>
    %6 = vector.shape_cast %5 : vector<1x256x128xf32> to vector<256x128xf32>
    %7 = vector.shape_cast %4 : vector<256x128xf32> to vector<1x256x128xf32>
    tpu.vector_store %arg4[%c0_4, %c0_5, %c0_6], %7 {strides = array<i32>} : memref<1x256x128xf32, #tpu.memory_space<vmem>>, vector<1x256x128xf32>,
    return
  }
  func.func @transform_0(%arg0: i32, %arg1: i32) -> (i32, i32) {
    %c0_i32 = arith.constant 0 : i32
    %c0_i32_0 = arith.constant 0 : i32
    return %arg0, %c0_i32 : i32, i32
  }
  func.func @transform_1(%arg0: i32, %arg1: i32) -> (i32, i32, i32) {
    %c0_i32 = arith.constant 0 : i32
    %c0_i32_0 = arith.constant 0 : i32
    return %arg1, %c0_i32, %arg0 : i32, i32, i32
  }
  func.func @transform_2(%arg0: i32, %arg1: i32) -> (i32, i32, i32) {
    %c0_i32 = arith.constant 0 : i32
    %c0_i32_0 = arith.constant 0 : i32
    return %arg1, %arg0, %c0_i32 : i32, i32, i32
  }
}

</mosaic_0001>

<bundles_post_ra>
// kernel: tpu_custom_call.1
= control target key start
LH: loop header
LB: loop body
LE: loop exit
PB: predicated region body
PF: predicated region fallthrough
CT: control target
= control target key end

     0   :  { %7 = vsyncpa [#allocation3], 0  ;;  %s1011_s0 = inlined_call_operand.hbm [shape: f32[256,128], index: 0, kind: input, shape index: {}]   ;;  %s1012_s1 = inlined_call_operand.hbm [shape: f32[2,128,256], index: 1, kind: input, shape index: {}]   ;;  %s1013_s2 = inlined_call_operand.hbm [shape: f32[2,256,128], index: 2, kind: output, shape index: {}]  }
   0x1   :  { %8 = vsyncpa [#allocation6], 0 }
   0x2   :  { %10 = vsyncpa [#allocation6 + $0x1], 0 }
   0x3   :  { %11 = vsyncpa [#allocation4], 0 }
   0x4   :  { %13 = vsyncpa [#allocation4 + $0x1], 0  ;;  %s789_s9 = smov 0   ;;  %s791_s10 = smov 0  }
   0x5   :  { %s793_s11 = smov 0   ;;  %s795_s12 = smov 0  }
   0x6   :  { %s797_s13 = smov 0   ;;  %s799_s14 = smov 0  }
   0x7 LB: > { %s521_s15 = sadd.s32 4294967295, %s765_s14   ;;  %s522_s16 = sadd.s32 4294967294, %s765_s14   ;;  %s765_s14 = sphi %s799_s14, %s19_s14   ;;  %s761_s13 = sphi %s797_s13, %s1025_s13   ;;  %s757_s12 = sphi %s795_s12, %s1024_s12   ;;  %s753_s11 = sphi %s793_s11, %s1023_s11   ;;  %s749_s10 = sphi %s791_s10, %s1022_s10   ;;  %s745_s9 = sphi %s789_s9, %s1021_s9  }
   0x8   : > { %p79_p0 = scmp.ne.s32.totalorder %s749_s10, %s745_s9  ;;  %p823_p1 = scmp.eq.s32.totalorder %s521_s15, 0 }
   0x9   : > { %p827_p2 = scmp.eq.s32.totalorder %s521_s15, 1  ;;  %p111_p3 = scmp.eq.s32.totalorder %s522_s16, 1 }
   0xa   : > { %p833_p4 = por %p823_p1, %p79_p0  ;;  %p523_p5 = scmp.ge.s32.totalorder %s765_s14, 1 }
   0xb   : > { %p838_p6 = por %p111_p3, %p79_p0  ;;  %p118_p7 = scmp.lt.s32.totalorder %s765_s14, 3 }
   0xc   : > { %s132_s23 = sshll.u32 %s1011_s0, 4  ;;  %s767_s25 = smov [#allocation2]   ;;  %s133_s23 = int_to_ptr.hbm [resolvable:$true] %s132_s23 }
   0xd   : > { %p846_p8 = pnand %p523_p5, %p118_p7  ;;  %s134_s26 = sshll.u32 %s767_s25, 4  ;;  %s135_s26 = int_to_ptr.vmem [resolvable:$true] %s134_s26 }
   0xe   : > { %p525_p11 = scmp.ge.s32.totalorder %s765_s14, 2  ;;  %s768_s27 = smov 128  }
   0xf   : > { %p548_p9 = pneg %p846_p8  ;;  %s769_s28 = smov 8  }
  0x10   : > { %s28_s29 = sadd.s32 1, %s761_s13  ;;  %s66_s30 = sadd.s32 1, %s753_s11 }
  0x11   : > { %p549_p10 = pnand %p548_p9, %p823_p1  ;;  %p29_p12 = scmp.ge.s32.totalorder %s28_s29, 2 }
  0x12   : > { %p73_p13 = scmp.ne.s32.totalorder %s753_s11, %s749_s10  ;;  %p74_p0 = scmp.eq.s32.totalorder %s765_s14, 0 }
  0x13   : > { %551 = dma.hbm_to_vmem [thread:$0]  (!%p549_p10), %s133_s23, 4096, %s135_s26, [#allocation3], %s768_s27, %s768_s27, %s769_s28  }
  0x14   : > { %s1027_s29 = smov (%p29_p12, %s28_s29), 0  ;;  %p862_p3 = por %p74_p0, %p73_p13 }
  0x15   : > { %p868_p5 = por %p827_p2, %p73_p13  ;;  %s61_s5 = ssub.s32 %s761_s13, %s1027_s29 }
  0x16   : > { %p561_p7 = scmp.lt.s32.totalorder %s765_s14, 2  ;;  %p64_p9 = scmp.eq.s32.totalorder %s61_s5, 0 }
  0x17   : > { %s148_s6 = sand.u32 1, %s753_s11   ;;  %s538_s15 = sshll.u32 %s761_s13, 8 }
  0x18   : > { %s526_s7 = sshll.u32 %s148_s6, 8  ;;  %s159_s22 = scalar_lea.hbm %s1012_s1, %s538_s15 }
  0x19   : > { %s877_s8 = scalar_select %p64_p9, %s753_s11, %s66_s30  }
  0x1a   : > { %s152_s23 = scalar_lea.vmem [#allocation5], %s526_s7  ;;  %s160_s18 = sshll.u32 %s159_s22, 4  ;;  %s161_s18 = int_to_ptr.hbm [resolvable:$true] %s160_s18 }
  0x1b   : > { %s162_s25 = sshll.u32 %s152_s23, 4  ;;  %p553_p2 = pnand %p561_p7, %p862_p3  ;;  %s163_s25 = int_to_ptr.vmem [resolvable:$true] %s162_s25 }
  0x1c   : > { %s149_s26 = scalar_lea.sflag [#allocation6], %s148_s6  ;;  %s770_s27 = smov 256  }
  0x1d   : > { %s771_s28 = smov 16   ;;  %174 = sbr.rel (%p846_p8) target bundleno = 332 (0x14c), region = 28 }
  0x1e   : > { %555 = dma.hbm_to_vmem [thread:$0]  (!%p553_p2), %s161_s18, 4096, %s163_s25, %s149_s26, %s770_s27, %s770_s27, %s771_s28  }
  0x22   : > { %732 = dma.done.wait (%p823_p1), [#allocation3], 4096  }
  0x23   : > { %734 = vsyncadd (%p823_p1), [#allocation3], 4294963200  ;;  %s892_s30 = sand.u32 1, %s749_s10  }
  0x24   : > { %s531_s3 = sshll.u32 %s892_s30, 8  ;;  %s182_s5 = scalar_lea.sflag [#allocation6], %s892_s30 }
  0x25   : > { %s898_s6 = scalar_lea.vmem [#allocation5], %s531_s3 }
  0x26   : > { %736 = dma.done.wait (%p833_p4), %s182_s5, 4096  }
  0x27   : > { %738 = vsyncadd (%p833_p4), %s182_s5, 4294963200  ;;  %v211_v0 = vld [vmem:[%s898_s6 + $0x8] sm:$0xff]  ;;  %v210_v1 = vld [vmem:[%s898_s6] sm:$0xff]  ;;  %s938_s17 = scalar_lea.vmem [#allocation7], %s531_s3  ;;  %s539_s19 = sshll.u32 %s757_s12, 8 }
  0x28   : > { %274 = vxpose.xlu1.b32.start [1/16] %v211_v0, 128  ;;  %242 = vxpose.xlu0.b32.start [1/16] %v210_v1, 128  ;;  %v213_v2 = vld [vmem:[%s898_s6 + $0x18] sm:$0xff]  ;;  %v212_v3 = vld [vmem:[%s898_s6 + $0x10] sm:$0xff]  ;;  %v215_v4 = vld [vmem:[%s898_s6 + $0x28] sm:$0xff]  ;;  %s416_s15 = scalar_lea.hbm %s1013_s2, %s539_s19  ;;  %s417_s16 = sshll.u32 %s938_s17, 4  ;;  %s418_s16 = int_to_ptr.vmem [resolvable:$true] %s417_s16 }
  0x29   : > { %v214_v5 = vld [vmem:[%s898_s6 + $0x20] sm:$0xff]  ;;  %v217_v6 = vld [vmem:[%s898_s6 + $0x38] sm:$0xff]  ;;  %v216_v7 = vld [vmem:[%s898_s6 + $0x30] sm:$0xff]  ;;  %s419_s21 = sshll.u32 %s416_s15, 4  ;;  %s403_s12 = scalar_lea.sflag [#allocation4], %s892_s30  ;;  %s420_s21 = int_to_ptr.hbm [resolvable:$true] %s419_s21 }
  0x2a   : > { %v219_v8 = vld [vmem:[%s898_s6 + $0x48] sm:$0xff]  ;;  %v218_v9 = vld [vmem:[%s898_s6 + $0x40] sm:$0xff]  ;;  %v221_v10 = vld [vmem:[%s898_s6 + $0x58] sm:$0xff]  ;;  %s693_s22 = sshra.s32 %s420_s21, 4  ;;  %s699_s26 = scalar_lea.hbm %s1013_s2, 512  ;;  %s694_s22 = int_to_ptr.hbm [resolvable:$true] %s693_s22 }
  0x2b   : > { %v220_v11 = vld [vmem:[%s898_s6 + $0x50] sm:$0xff]  ;;  %v223_v12 = vld [vmem:[%s898_s6 + $0x68] sm:$0xff]  ;;  %v222_v13 = vld [vmem:[%s898_s6 + $0x60] sm:$0xff]  ;;  %s695_s23 = scalar_lea.hbm %s694_s22, 256  ;;  %p700_p10 = scmp.lt.s32.totalorder %s694_s22, %s1013_s2 }
  0x2c   : > { %v225_v14 = vld [vmem:[%s898_s6 + $0x78] sm:$0xff]  ;;  %v224_v15 = vld [vmem:[%s898_s6 + $0x70] sm:$0xff]  ;;  %v227_v16 = vld [vmem:[%s898_s6 + $0x88] sm:$0xff]  ;;  %p696_p1 = scmp.ne.s32.totalorder %s694_s22, %s695_s23  ;;  %p701_p12 = scmp.lt.s32.totalorder %s699_s26, %s695_s23 }
  0x2d   : > { %v226_v17 = vld [vmem:[%s898_s6 + $0x80] sm:$0xff]  ;;  %v229_v18 = vld [vmem:[%s898_s6 + $0x98] sm:$0xff]  ;;  %v228_v19 = vld [vmem:[%s898_s6 + $0x90] sm:$0xff] }
  0x2e   : > { %v231_v20 = vld [vmem:[%s898_s6 + $0xa8] sm:$0xff]  ;;  %v230_v21 = vld [vmem:[%s898_s6 + $0xa0] sm:$0xff]  ;;  %v233_v22 = vld [vmem:[%s898_s6 + $0xb8] sm:$0xff]  ;;  %p697_p4 = pnand %p696_p1, %p868_p5  ;;  %p702_p13 = por %p701_p12, %p700_p10 }
  0x2f   : > { %v232_v23 = vld [vmem:[%s898_s6 + $0xb0] sm:$0xff]  ;;  %v235_v24 = vld [vmem:[%s898_s6 + $0xc8] sm:$0xff]  ;;  %v234_v25 = vld [vmem:[%s898_s6 + $0xc0] sm:$0xff] }
  0x30   : > { %275 = vxpose.xlu1.b32.cont [2/16] %v213_v2, 128  ;;  %243 = vxpose.xlu0.b32.cont [2/16] %v212_v3, 128  ;;  %v237_v26 = vld [vmem:[%s898_s6 + $0xd8] sm:$0xff]  ;;  %v236_v27 = vld [vmem:[%s898_s6 + $0xd0] sm:$0xff]  ;;  %v239_v28 = vld [vmem:[%s898_s6 + $0xe8] sm:$0xff]  ;;  %p698_p8 = pneg %p697_p4 }
  0x31   : > { %v238_v29 = vld [vmem:[%s898_s6 + $0xe0] sm:$0xff]  ;;  %v241_v30 = vld [vmem:[%s898_s6 + $0xf8] sm:$0xff]  ;;  %v240_v31 = vld [vmem:[%s898_s6 + $0xf0] sm:$0xff] }
  0x32   : > { %v322_v32 = vld [vmem:[#allocation2 + $0x80] sm:$0xff]  ;;  %v323_v38 = vld [vmem:[#allocation2 + $0x88] sm:$0xff]  ;;  %v324_v44 = vld [vmem:[#allocation2 + $0x90] sm:$0xff]  ;;  %p703_p0 = pnand %p702_p13, %p698_p8 }
  0x33   : > { %v306_v33 = vld [vmem:[#allocation2] sm:$0xff]  ;;  %v307_v39 = vld [vmem:[#allocation2 + $0x8] sm:$0xff]  ;;  %v308_v45 = vld [vmem:[#allocation2 + $0x10] sm:$0xff] }
  0x34   : > { %v325_v50 = vld [vmem:[#allocation2 + $0x98] sm:$0xff]  ;;  %v326_v56 = vld [vmem:[#allocation2 + $0xa0] sm:$0xff]  ;;  %v327_v62 = vld [vmem:[#allocation2 + $0xa8] sm:$0xff] }
  0x35   : > { %v309_v51 = vld [vmem:[#allocation2 + $0x18] sm:$0xff]  ;;  %v310_v57 = vld [vmem:[#allocation2 + $0x20] sm:$0xff]  ;;  %v311_v63 = vld [vmem:[#allocation2 + $0x28] sm:$0xff] }
  0x38   : > { %276 = vxpose.xlu1.b32.cont [3/16] %v215_v4, 128  ;;  %244 = vxpose.xlu0.b32.cont [3/16] %v214_v5, 128  ;;  %v328_v4 = vld [vmem:[#allocation2 + $0xb0] sm:$0xff] }
  0x39   : > { %v312_v5 = vld [vmem:[#allocation2 + $0x30] sm:$0xff] }
  0x40   : > { %277 = vxpose.xlu1.b32.cont [4/16] %v217_v6, 128  ;;  %245 = vxpose.xlu0.b32.cont [4/16] %v216_v7, 128 }
  0x48   : > { %278 = vxpose.xlu1.b32.cont [5/16] %v219_v8, 128  ;;  %246 = vxpose.xlu0.b32.cont [5/16] %v218_v9, 128 }
  0x50   : > { %279 = vxpose.xlu1.b32.cont [6/16] %v221_v10, 128  ;;  %247 = vxpose.xlu0.b32.cont [6/16] %v220_v11, 128  ;;  %v329_v10 = vld [vmem:[#allocation2 + $0xb8] sm:$0xff] }
  0x51   : > { %v313_v11 = vld [vmem:[#allocation2 + $0x38] sm:$0xff] }
  0x58   : > { %280 = vxpose.xlu1.b32.cont [7/16] %v223_v12, 128  ;;  %248 = vxpose.xlu0.b32.cont [7/16] %v222_v13, 128 }
  0x60   : > { %281 = vxpose.xlu1.b32.cont [8/16] %v225_v14, 128  ;;  %249 = vxpose.xlu0.b32.cont [8/16] %v224_v15, 128 }
  0x68   : > { %282 = vxpose.xlu1.b32.cont [9/16] %v227_v16, 128  ;;  %250 = vxpose.xlu0.b32.cont [9/16] %v226_v17, 128  ;;  %v330_v16 = vld [vmem:[#allocation2 + $0xc0] sm:$0xff] }
  0x69   : > { %v314_v17 = vld [vmem:[#allocation2 + $0x40] sm:$0xff] }
  0x70   : > { %283 = vxpose.xlu1.b32.cont [10/16] %v229_v18, 128  ;;  %251 = vxpose.xlu0.b32.cont [10/16] %v228_v19, 128 }
  0x78   : > { %284 = vxpose.xlu1.b32.cont [11/16] %v231_v20, 128  ;;  %252 = vxpose.xlu0.b32.cont [11/16] %v230_v21, 128 }
  0x80   : > { %285 = vxpose.xlu1.b32.cont [12/16] %v233_v22, 128  ;;  %253 = vxpose.xlu0.b32.cont [12/16] %v232_v23, 128  ;;  %v331_v22 = vld [vmem:[#allocation2 + $0xc8] sm:$0xff] }
  0x81   : > { %v315_v23 = vld [vmem:[#allocation2 + $0x48] sm:$0xff] }
  0x88   : > { %286 = vxpose.xlu1.b32.cont [13/16] %v235_v24, 128  ;;  %254 = vxpose.xlu0.b32.cont [13/16] %v234_v25, 128 }
  0x90   : > { %287 = vxpose.xlu1.b32.cont [14/16] %v237_v26, 128  ;;  %255 = vxpose.xlu0.b32.cont [14/16] %v236_v27, 128 }
  0x98   : > { %288 = vxpose.xlu1.b32.cont [15/16] %v239_v28, 128  ;;  %256 = vxpose.xlu0.b32.cont [15/16] %v238_v29, 128  ;;  %v332_v28 = vld [vmem:[#allocation2 + $0xd0] sm:$0xff] }
  0x99   : > { %v316_v29 = vld [vmem:[#allocation2 + $0x50] sm:$0xff] }
  0xa0   : > { %289 = vxpose.xlu1.b32.end [16/16] %v241_v30, 128  ;;  %257 = vxpose.xlu0.b32.end [16/16] %v240_v31, 128 }
  0xcc   : > { %v290_v34 = vpop.trf.xlu1  ;;  %v258_v35 = vpop.trf.xlu0 }
  0xcd   : > { %v354_v36 = vadd.f32 %v322_v32, %v290_v34  ;;  %v338_v37 = vadd.f32 %v306_v33, %v258_v35  ;;  %v333_v34 = vld [vmem:[#allocation2 + $0xd8] sm:$0xff] }
  0xce   : > { %v317_v35 = vld [vmem:[#allocation2 + $0x58] sm:$0xff] }
  0xcf   : > { %386 = vst [vmem:[%s938_s17 + $0x80] sm:$0xff] %v354_v36 }
  0xd0   : > { %370 = vst [vmem:[%s938_s17] sm:$0xff] %v338_v37 }
  0xd4   : > { %v291_v40 = vpop.trf.xlu1  ;;  %v259_v41 = vpop.trf.xlu0 }
  0xd5   : > { %v355_v42 = vadd.f32 %v323_v38, %v291_v40  ;;  %v339_v43 = vadd.f32 %v307_v39, %v259_v41  ;;  %v334_v40 = vld [vmem:[#allocation2 + $0xe0] sm:$0xff] }
  0xd6   : > { %v318_v41 = vld [vmem:[#allocation2 + $0x60] sm:$0xff] }
  0xd7   : > { %387 = vst [vmem:[%s938_s17 + $0x88] sm:$0xff] %v355_v42 }
  0xd8   : > { %371 = vst [vmem:[%s938_s17 + $0x8] sm:$0xff] %v339_v43 }
  0xdc   : > { %v292_v46 = vpop.trf.xlu1  ;;  %v260_v47 = vpop.trf.xlu0 }
  0xdd   : > { %v356_v48 = vadd.f32 %v324_v44, %v292_v46  ;;  %v340_v49 = vadd.f32 %v308_v45, %v260_v47  ;;  %v335_v46 = vld [vmem:[#allocation2 + $0xe8] sm:$0xff] }
  0xde   : > { %v319_v47 = vld [vmem:[#allocation2 + $0x68] sm:$0xff] }
  0xdf   : > { %388 = vst [vmem:[%s938_s17 + $0x90] sm:$0xff] %v356_v48 }
  0xe0   : > { %372 = vst [vmem:[%s938_s17 + $0x10] sm:$0xff] %v340_v49 }
  0xe4   : > { %v293_v52 = vpop.trf.xlu1  ;;  %v261_v53 = vpop.trf.xlu0 }
  0xe5   : > { %v357_v54 = vadd.f32 %v325_v50, %v293_v52  ;;  %v341_v55 = vadd.f32 %v309_v51, %v261_v53  ;;  %v336_v52 = vld [vmem:[#allocation2 + $0xf0] sm:$0xff] }
  0xe6   : > { %v320_v53 = vld [vmem:[#allocation2 + $0x70] sm:$0xff] }
  0xe7   : > { %389 = vst [vmem:[%s938_s17 + $0x98] sm:$0xff] %v357_v54 }
  0xe8   : > { %373 = vst [vmem:[%s938_s17 + $0x18] sm:$0xff] %v341_v55 }
  0xec   : > { %v294_v58 = vpop.trf.xlu1  ;;  %v262_v59 = vpop.trf.xlu0 }
  0xed   : > { %v358_v60 = vadd.f32 %v326_v56, %v294_v58  ;;  %v342_v61 = vadd.f32 %v310_v57, %v262_v59  ;;  %v337_v58 = vld [vmem:[#allocation2 + $0xf8] sm:$0xff] }
  0xee   : > { %v321_v59 = vld [vmem:[#allocation2 + $0x78] sm:$0xff] }
  0xef   : > { %390 = vst [vmem:[%s938_s17 + $0xa0] sm:$0xff] %v358_v60 }
  0xf0   : > { %374 = vst [vmem:[%s938_s17 + $0x20] sm:$0xff] %v342_v61 }
  0xf4   : > { %v295_v0 = vpop.trf.xlu1  ;;  %v263_v1 = vpop.trf.xlu0 }
  0xf5   : > { %v359_v2 = vadd.f32 %v327_v62, %v295_v0  ;;  %v343_v3 = vadd.f32 %v311_v63, %v263_v1 }
  0xf7   : > { %391 = vst [vmem:[%s938_s17 + $0xa8] sm:$0xff] %v359_v2 }
  0xf8   : > { %375 = vst [vmem:[%s938_s17 + $0x28] sm:$0xff] %v343_v3 }
  0xfc   : > { %v296_v6 = vpop.trf.xlu1  ;;  %v264_v7 = vpop.trf.xlu0 }
  0xfd   : > { %v360_v8 = vadd.f32 %v328_v4, %v296_v6  ;;  %v344_v9 = vadd.f32 %v312_v5, %v264_v7 }
  0xff   : > { %392 = vst [vmem:[%s938_s17 + $0xb0] sm:$0xff] %v360_v8 }
 0x100   : > { %376 = vst [vmem:[%s938_s17 + $0x30] sm:$0xff] %v344_v9 }
 0x104   : > { %v297_v12 = vpop.trf.xlu1  ;;  %v265_v13 = vpop.trf.xlu0 }
 0x105   : > { %v361_v14 = vadd.f32 %v329_v10, %v297_v12  ;;  %v345_v15 = vadd.f32 %v313_v11, %v265_v13 }
 0x107   : > { %393 = vst [vmem:[%s938_s17 + $0xb8] sm:$0xff] %v361_v14 }
 0x108   : > { %377 = vst [vmem:[%s938_s17 + $0x38] sm:$0xff] %v345_v15 }
 0x10c   : > { %v298_v18 = vpop.trf.xlu1  ;;  %v266_v19 = vpop.trf.xlu0 }
 0x10d   : > { %v362_v20 = vadd.f32 %v330_v16, %v298_v18  ;;  %v346_v21 = vadd.f32 %v314_v17, %v266_v19 }
 0x10f   : > { %394 = vst [vmem:[%s938_s17 + $0xc0] sm:$0xff] %v362_v20 }
 0x110   : > { %378 = vst [vmem:[%s938_s17 + $0x40] sm:$0xff] %v346_v21 }
 0x114   : > { %v299_v24 = vpop.trf.xlu1  ;;  %v267_v25 = vpop.trf.xlu0 }
 0x115   : > { %v363_v26 = vadd.f32 %v331_v22, %v299_v24  ;;  %v347_v27 = vadd.f32 %v315_v23, %v267_v25 }
 0x117   : > { %395 = vst [vmem:[%s938_s17 + $0xc8] sm:$0xff] %v363_v26 }
 0x118   : > { %379 = vst [vmem:[%s938_s17 + $0x48] sm:$0xff] %v347_v27 }
 0x11c   : > { %v300_v30 = vpop.trf.xlu1  ;;  %v268_v31 = vpop.trf.xlu0 }
 0x11d   : > { %v364_v32 = vadd.f32 %v332_v28, %v300_v30  ;;  %v348_v33 = vadd.f32 %v316_v29, %v268_v31 }
 0x11f   : > { %396 = vst [vmem:[%s938_s17 + $0xd0] sm:$0xff] %v364_v32 }
 0x120   : > { %380 = vst [vmem:[%s938_s17 + $0x50] sm:$0xff] %v348_v33 }
 0x124   : > { %v301_v36 = vpop.trf.xlu1  ;;  %v269_v37 = vpop.trf.xlu0 }
 0x125   : > { %v365_v38 = vadd.f32 %v333_v34, %v301_v36  ;;  %v349_v39 = vadd.f32 %v317_v35, %v269_v37 }
 0x127   : > { %397 = vst [vmem:[%s938_s17 + $0xd8] sm:$0xff] %v365_v38 }
 0x128   : > { %381 = vst [vmem:[%s938_s17 + $0x58] sm:$0xff] %v349_v39 }
 0x12c   : > { %v302_v42 = vpop.trf.xlu1  ;;  %v270_v43 = vpop.trf.xlu0 }
 0x12d   : > { %v366_v44 = vadd.f32 %v334_v40, %v302_v42  ;;  %v350_v45 = vadd.f32 %v318_v41, %v270_v43 }
 0x12f   : > { %398 = vst [vmem:[%s938_s17 + $0xe0] sm:$0xff] %v366_v44 }
 0x130   : > { %382 = vst [vmem:[%s938_s17 + $0x60] sm:$0xff] %v350_v45 }
 0x134   : > { %v303_v48 = vpop.trf.xlu1  ;;  %v271_v49 = vpop.trf.xlu0 }
 0x135   : > { %v367_v50 = vadd.f32 %v335_v46, %v303_v48  ;;  %v351_v51 = vadd.f32 %v319_v47, %v271_v49 }
 0x137   : > { %399 = vst [vmem:[%s938_s17 + $0xe8] sm:$0xff] %v367_v50 }
 0x138   : > { %383 = vst [vmem:[%s938_s17 + $0x68] sm:$0xff] %v351_v51 }
 0x13c   : > { %v304_v54 = vpop.trf.xlu1  ;;  %v272_v55 = vpop.trf.xlu0 }
 0x13d   : > { %v368_v56 = vadd.f32 %v336_v52, %v304_v54  ;;  %v352_v57 = vadd.f32 %v320_v53, %v272_v55 }
 0x13f   : > { %400 = vst [vmem:[%s938_s17 + $0xf0] sm:$0xff] %v368_v56 }
 0x140   : > { %384 = vst [vmem:[%s938_s17 + $0x70] sm:$0xff] %v352_v57 }
 0x144   : > { %v305_v60 = vpop.trf.xlu1  ;;  %v273_v61 = vpop.trf.xlu0 }
 0x145   : > { %v369_v62 = vadd.f32 %v337_v58, %v305_v60  ;;  %v353_v63 = vadd.f32 %v321_v59, %v273_v61 }
 0x147   : > { %401 = vst [vmem:[%s938_s17 + $0xf8] sm:$0xff] %v369_v62 }
 0x148   : > { %385 = vst [vmem:[%s938_s17 + $0x78] sm:$0xff] %v353_v63 }
 0x149   : > { %706 = shalt.err (!%p703_p0)
}
 0x14a   : > { %s772_s30 = smov 128   ;;  %s773_s3 = smov 8  }
 0x14b   : > { %546 = dma.vmem_to_hbm [thread:$0]  (%p868_p5), %s418_s16, 4096, %s420_s21, %s403_s12, %s772_s30, %s772_s30, %s773_s3  }
 0x14c PF: > { %s434_s5 = sand.u32 1, %s745_s9   ;;  %p557_p3 = pnand %p525_p11, %p838_p6 }
 0x14d   : > { %s435_s6 = scalar_lea.sflag [#allocation4], %s434_s5 }
 0x14e   : > { %p558_p7 = pneg %p557_p3 }
 0x150   : > { %740 = dma.done.wait (%p558_p7), %s435_s6, 4096  }
 0x151   : > { %742 = vsyncadd (%p558_p7), %s435_s6, 4294963200  ;;  %s19_s14 = sadd.s32 1, %s765_s14   ;;  %s1021_s9 = smov %s749_s10 }
 0x152   : > { %p16_p9 = scmp.ge.s32.totalorder %s19_s14, 4   ;;  %s1022_s10 = smov %s753_s11 }
 0x153   : > { %s1023_s11 = smov %s877_s8  ;;  %s1024_s12 = smov %s761_s13 }
 0x154   : > { %s1025_s13 = smov %s1027_s29  ;;  %18 = sbr.rel (!%p16_p9) target bundleno = 7 (0x7), region = 79 }
 0x159   :  { %441 = vsyncpa [#allocation3], 1 }
 0x15a   :  { %443 = vsyncpa [#allocation3 + $0x1], 1 }
 0x15b   :  { %444 = vsyncpa [#allocation6], 1 }
 0x15c   :  { %446 = vsyncpa [#allocation6 + $0x1], 1 }
 0x15d   :  { %447 = vsyncpa [#allocation4], 1 }
 0x15e   :  { %449 = vsyncpa [#allocation4 + $0x1], 1 }

</bundles_post_ra>
